<compile_context>
chip_gen: v5e
topology: v5e:2x2
jax: 0.10.0
libtpu: 0.0.40
codegen_flags: <defaults>
</compile_context>

<pallas_src>
import jax
import jax.numpy as jnp
from jax.experimental import pallas as pl
from jax.experimental.pallas import tpu as pltpu

LN_EPS = 1e-5                       # torch.nn.LayerNorm default
_INV_SQRT2 = 0.7071067811865476     # for exact-erf GELU (torch nn.GELU default)


# --------------------------------------------------------------------------- #
# Kernel
# --------------------------------------------------------------------------- #
def _ffw_kernel(x_ref, g_ref, b_ref, w1_ref, w2_ref, out_ref, xn_ref, acc_ref):
    j = pl.program_id(1)

    # ---- hidden step 0: LayerNorm (f32 stats on bf16 input) + zero accumulator ----
    @pl.when(j == 0)
    def _():
        x = x_ref[...].astype(jnp.float32)                        # (TR, D)
        mu = jnp.mean(x, axis=-1, keepdims=True)
        var = jnp.mean((x - mu) ** 2, axis=-1, keepdims=True)
        xn = (x - mu) * jax.lax.rsqrt(var + LN_EPS) * g_ref[...] + b_ref[...]
        xn_ref[...] = xn.astype(jnp.bfloat16)                     # cached across hidden steps
        acc_ref[...] = jnp.zeros_like(acc_ref)

    # ---- one hidden chunk: (TR,D)@(D,TH) -> GELU -> (TR,TH)@(TH,D), accumulate ----
    h = jnp.dot(xn_ref[...], w1_ref[...],
                preferred_element_type=jnp.float32)               # (TR, TH) f32
    gel = 0.5 * h * (1.0 + jax.lax.erf(h * _INV_SQRT2))           # exact GELU (torch default)
    acc_ref[...] += jnp.dot(gel.astype(jnp.bfloat16), w2_ref[...],
                            preferred_element_type=jnp.float32)   # (TR, D) f32

    # ---- finalize ----
    @pl.when(j == pl.num_programs(1) - 1)
    def _():
        out_ref[...] = acc_ref[...].astype(out_ref.dtype)


# --------------------------------------------------------------------------- #
# Tiling / device heuristics
# --------------------------------------------------------------------------- #
def _round_up(x, m):
    return ((x + m - 1) // m) * m


def _device_config():
    """VMEM limit / tile budget / core count by chip generation."""
    try:
        kind = jax.devices()[0].device_kind.lower()
    except Exception:
        kind = ""
    if "v7" in kind:
        # 64 MiB VMEM per TensorCore, 2 TCs per chip.
        return {"vmem_limit": 56 * 2**20, "tile_budget": 46 * 2**20, "num_cores": 2}
    # v5e / v6e (128 MiB VMEM, 1 TC) and default.
    return {"vmem_limit": 100 * 2**20, "tile_budget": 86 * 2**20, "num_cores": 1}


def _largest_aligned_divisor(total, align, cap):
    """Largest divisor of `total` that is a multiple of `align` and <= cap.

    `total` must be a multiple of `align` (so `align` itself always works)."""
    t = min(cap, total)
    t = (t // align) * align
    while t >= align:
        if total % t == 0:
            return t
        t -= align
    return align


def _choose_tiles(rows, d, hid, cfg):
    budget = cfg["tile_budget"]
    num_cores = cfg["num_cores"]

    # Hidden tile: 256-lane aligned (2x256x256 MXU on v6e/v7x), divides padded hid.
    th_align = 256 if hid >= 256 else 128
    hid_pad = _round_up(hid, th_align)
    th = _largest_aligned_divisor(hid_pad, th_align, 1024)

    # Per-call VMEM bytes (incl. compiler temporaries h f32 / gel bf16):
    #   x bf16 2-buf (2*tr*d*2) + out f32 2-buf (2*tr*d*4) + xn/acc scratch (tr*d*6)
    #   + W1/W2 bf16 2-buf (8*d*th) + h/gel temporaries (tr*th*6) + LN params (small)
    def _tr_budget(th_):
        fixed = 8 * d * th_ + 4 * d * 16
        per_row = 18 * d + 6 * th_
        return max(8, ((budget - fixed) // per_row) // 8 * 8)

    tr_budget = _tr_budget(th)
    # If the row-tile budget is cramped, trade hidden-tile width for row depth.
    while tr_budget < 256 and th > th_align:
        th_half = th // 2
        if th_half % th_align or hid_pad % th_half:
            break
        th = th_half
        tr_budget = _tr_budget(th)

    # Row tile: as large as rows / budget allow (cap 1024), balanced across tiles,
    # with an even tile count on 2-TC chips so the "parallel" axis shards evenly.
    tr_pref = min(1024, tr_budget, _round_up(rows, 8))
    n = -(-rows // tr_pref)
    if num_cores > 1 and n > 1 and n % num_cores != 0:
        n = _round_up(n, num_cores)
    tr = _round_up(-(-rows // n), 8)
    rows_pad = n * tr
    return tr, th, rows_pad, hid_pad


# --------------------------------------------------------------------------- #
# Wrapper
# --------------------------------------------------------------------------- #
def feed_forward(x, params, *, block_rows=None, block_hidden=None):
    """x: (..., dim). params: ln_g, ln_b (dim,), w1 (dim, dim*mul), w2 (dim*mul, dim).

    Weights should already be bf16 (cast once outside the per-call hot path)."""
    orig_shape = x.shape
    d = orig_shape[-1]
    rows = 1
    for s in orig_shape[:-1]:
        rows *= s

    w1 = params["w1"]
    w2 = params["w2"]
    if w1.dtype != jnp.bfloat16:
        w1 = w1.astype(jnp.bfloat16)
    if w2.dtype != jnp.bfloat16:
        w2 = w2.astype(jnp.bfloat16)
    hid = w1.shape[1]
    ln_g = params["ln_g"].reshape(1, d).astype(jnp.float32)
    ln_b = params["ln_b"].reshape(1, d).astype(jnp.float32)

    cfg = _device_config()
    tr, th, rows_pad, hid_pad = _choose_tiles(rows, d, hid, cfg)
    if block_rows is not None:
        tr = block_rows
        rows_pad = _round_up(rows, tr)
    if block_hidden is not None:
        th = block_hidden
        hid_pad = _round_up(hid, th)

    # bf16 activations into the kernel (halves x DMA / residency); padded rows are
    # zeros and are sliced off after the call.
    x2 = x.reshape(rows, d).astype(jnp.bfloat16)
    if rows_pad != rows:
        x2 = jnp.pad(x2, ((0, rows_pad - rows), (0, 0)))
    if hid_pad != hid:
        # Zero hidden padding is exact: GELU(0) == 0 contributes nothing downstream.
        w1 = jnp.pad(w1, ((0, 0), (0, hid_pad - hid)))
        w2 = jnp.pad(w2, ((0, hid_pad - hid), (0, 0)))

    grid = (rows_pad // tr, hid_pad // th)

    out = pl.pallas_call(
        _ffw_kernel,
        out_shape=jax.ShapeDtypeStruct((rows_pad, d), jnp.float32),
        grid=grid,
        in_specs=[
            pl.BlockSpec((tr, d), lambda i, j: (i, 0)),      # x rows (read at j==0 only)
            pl.BlockSpec((1, d), lambda i, j: (0, 0)),       # LN gamma
            pl.BlockSpec((1, d), lambda i, j: (0, 0)),       # LN beta
            pl.BlockSpec((d, th), lambda i, j: (0, j)),      # W1 hidden chunk (bf16)
            pl.BlockSpec((th, d), lambda i, j: (j, 0)),      # W2 hidden chunk (bf16)
        ],
        out_specs=pl.BlockSpec((tr, d), lambda i, j: (i, 0)),
        scratch_shapes=[
            pltpu.VMEM((tr, d), jnp.bfloat16),               # cached LayerNorm(x) tile
            pltpu.VMEM((tr, d), jnp.float32),                # output accumulator
        ],
        compiler_params=pltpu.CompilerParams(
            dimension_semantics=("parallel", "arbitrary"),
            vmem_limit_bytes=cfg["vmem_limit"],
        ),
    )(x2, ln_g, ln_b, w1, w2)

    if rows_pad != rows:
        out = out[:rows]
    return out.reshape(orig_shape)


# --------------------------------------------------------------------------- #
# Reference + params
# --------------------------------------------------------------------------- #
def feed_forward_ref(x, params):
    """Pure-JAX f32 reference (matches the torch module)."""
    mu = jnp.mean(x, axis=-1, keepdims=True)
    var = jnp.mean((x - mu) ** 2, axis=-1, keepdims=True)
    xn = (x - mu) * jax.lax.rsqrt(var + LN_EPS) * params["ln_g"] + params["ln_b"]
    h = xn @ params["w1"]
    gel = 0.5 * h * (1.0 + jax.lax.erf(h * _INV_SQRT2))
    return gel @ params["w2"]


def init_params(key, dim, mul):
    k1, k2 = jax.random.split(key, 2)
    nrm = lambda k, shape: (0.05 * jax.random.normal(k, shape)).astype(jnp.float32)
    return {
        "ln_g": jnp.ones((dim,), jnp.float32),
        "ln_b": jnp.zeros((dim,), jnp.float32),
        # Linear weights stored (in, out) == torch weight transposed (bias=False).
        "w1": nrm(k1, (dim, dim * mul)),
        "w2": nrm(k2, (dim * mul, dim)),
    }


if __name__ == "__main__":
    # Small shapes consistent with the module: (batch, seq, dim), mul=4.
    B, N, D, MUL = 2, 8, 64, 4

    key = jax.random.PRNGKey(0)
    k_x, k_p = jax.random.split(key)
    x = jax.random.normal(k_x, (B, N, D), dtype=jnp.float32)
    params = init_params(k_p, D, MUL)

    # Cast weights to bf16 ONCE, outside the per-call hot path (review item).
    params_dev = dict(params)
    params_dev["w1"] = params["w1"].astype(jnp.bfloat16)
    params_dev["w2"] = params["w2"].astype(jnp.bfloat16)

    ref = feed_forward_ref(x, params)

    # 1) Auto-tiled path (device-aware VMEM budgeting).
    out = feed_forward(x, params_dev)
    jax.block_until_ready(out)
    assert out.shape == (B, N, D)
    assert jnp.allclose(out, ref, atol=3e-2, rtol=3e-2), float(jnp.max(jnp.abs(out - ref)))

    # 2) Explicit small tiles: 2 row tiles x 2 hidden chunks, exercising the
    #    parallel axis and the accumulator init/step/finalize path.
    out2 = feed_forward(x, params_dev, block_rows=8, block_hidden=128)
    jax.block_until_ready(out2)
    assert jnp.allclose(out2, ref, atol=3e-2, rtol=3e-2), float(jnp.max(jnp.abs(out2 - ref)))

    # 3) Non-divisible row count (ragged) to exercise wrapper-side zero padding.
    x3 = jax.random.normal(jax.random.PRNGKey(1), (B, N + 1, D), dtype=jnp.float32)
    out3 = feed_forward(x3, params_dev)
    jax.block_until_ready(out3)
    ref3 = feed_forward_ref(x3, params)
    assert out3.shape == (B, N + 1, D)
    assert jnp.allclose(out3, ref3, atol=3e-2, rtol=3e-2), float(jnp.max(jnp.abs(out3 - ref3)))

    print("KERNEL_OK")
</pallas_src>

<mosaic_0001>
module attributes {stable_mosaic.version = 11 : i64} {
  func.func @_ffw_kernel(%arg0: i32, %arg1: i32, %arg2: memref<16x64xbf16, #tpu.memory_space<vmem>>, %arg3: memref<1x64xf32, #tpu.memory_space<vmem>>, %arg4: memref<1x64xf32, #tpu.memory_space<vmem>>, %arg5: memref<64x256xbf16, #tpu.memory_space<vmem>>, %arg6: memref<256x64xbf16, #tpu.memory_space<vmem>>, %arg7: memref<16x64xf32, #tpu.memory_space<vmem>>, %arg8: memref<16x64xbf16, #tpu.memory_space<vmem>>, %arg9: memref<16x64xf32, #tpu.memory_space<vmem>>) attributes {dimension_semantics = [#tpu.dimension_semantics<parallel>, #tpu.dimension_semantics<arbitrary>], iteration_bounds = array<i64: 1, 1>, scalar_prefetch = 0 : i64, scratch_operands = 2 : i64, tpu.core_type = #tpu.core_type<tc>, window_params = [{transform_indices = @transform_0, window_bounds = array<i64: 16, 64>}, {pipeline_mode = #tpu.pipeline_mode<synchronous>, transform_indices = @transform_1, window_bounds = array<i64: 1, 64>}, {pipeline_mode = #tpu.pipeline_mode<synchronous>, transform_indices = @transform_2, window_bounds = array<i64: 1, 64>}, {transform_indices = @transform_3, window_bounds = array<i64: 64, 256>}, {transform_indices = @transform_4, window_bounds = array<i64: 256, 64>}, {transform_indices = @transform_5, window_bounds = array<i64: 16, 64>}]} {
    %c0_i32 = arith.constant 0 : i32
    %0 = arith.cmpi eq, %arg1, %c0_i32 : i32
    %1 = arith.extui %0 : i1 to i32
    %c0_i32_0 = arith.constant 0 : i32
    %2 = arith.cmpi ne, %1, %c0_i32_0 : i32
    scf.if %2 {
      %c0_16 = arith.constant 0 : index
      %c0_17 = arith.constant 0 : index
      %23 = vector.load %arg2[%c0_16, %c0_17] : memref<16x64xbf16, #tpu.memory_space<vmem>>, vector<16x64xbf16>
      %24 = arith.extf %23 : vector<16x64xbf16> to vector<16x64xf32>
      %cst_18 = arith.constant dense<0.000000e+00> : vector<16xf32>
      %25 = vector.multi_reduction <add>, %24, %cst_18 [1] : vector<16x64xf32> to vector<16xf32>
      %26 = vector.shape_cast %25 : vector<16xf32> to vector<16x1xf32>
      %cst_19 = arith.constant 6.400000e+01 : f32
      %27 = vector.broadcast %cst_19 : f32 to vector<16x1xf32>
      %28 = arith.divf %26, %27 : vector<16x1xf32>
      %29 = vector.broadcast %28 : vector<16x1xf32> to vector<16x64xf32>
      %30 = arith.subf %24, %29 : vector<16x64xf32>
      %31 = arith.mulf %30, %30 : vector<16x64xf32>
      %cst_20 = arith.constant dense<0.000000e+00> : vector<16xf32>
      %32 = vector.multi_reduction <add>, %31, %cst_20 [1] : vector<16x64xf32> to vector<16xf32>
      %33 = vector.shape_cast %32 : vector<16xf32> to vector<16x1xf32>
      %cst_21 = arith.constant 6.400000e+01 : f32
      %34 = vector.broadcast %cst_21 : f32 to vector<16x1xf32>
      %35 = arith.divf %33, %34 : vector<16x1xf32>
      %36 = vector.broadcast %28 : vector<16x1xf32> to vector<16x64xf32>
      %37 = arith.subf %24, %36 : vector<16x64xf32>
      %cst_22 = arith.constant 9.99999974E-6 : f32
      %38 = vector.broadcast %cst_22 : f32 to vector<16x1xf32>
      %39 = arith.addf %35, %38 : vector<16x1xf32>
      %40 = math.rsqrt %39 : vector<16x1xf32>
      %41 = vector.broadcast %40 : vector<16x1xf32> to vector<16x64xf32>
      %42 = arith.mulf %37, %41 : vector<16x64xf32>
      %c0_23 = arith.constant 0 : index
      %c0_24 = arith.constant 0 : index
      %43 = vector.load %arg3[%c0_23, %c0_24] : memref<1x64xf32, #tpu.memory_space<vmem>>, vector<1x64xf32>
      %44 = vector.broadcast %43 : vector<1x64xf32> to vector<16x64xf32>
      %45 = arith.mulf %42, %44 : vector<16x64xf32>
      %c0_25 = arith.constant 0 : index
      %c0_26 = arith.constant 0 : index
      %46 = vector.load %arg4[%c0_25, %c0_26] : memref<1x64xf32, #tpu.memory_space<vmem>>, vector<1x64xf32>
      %47 = vector.broadcast %46 : vector<1x64xf32> to vector<16x64xf32>
      %48 = arith.addf %45, %47 : vector<16x64xf32>
      %49 = arith.truncf %48 : vector<16x64xf32> to vector<16x64xbf16>
      %c0_27 = arith.constant 0 : index
      %c0_28 = arith.constant 0 : index
      %50 = vector.load %arg8[%c0_27, %c0_28] : memref<16x64xbf16, #tpu.memory_space<vmem>>, vector<16x64xbf16>
      tpu.vector_store %arg8[%c0_27, %c0_28], %49 {strides = array<i32>} : memref<16x64xbf16, #tpu.memory_space<vmem>>, vector<16x64xbf16>,
      %cst_29 = arith.constant 0.000000e+00 : f32
      %51 = vector.broadcast %cst_29 : f32 to vector<16x64xf32>
      %c0_30 = arith.constant 0 : index
      %c0_31 = arith.constant 0 : index
      %52 = vector.load %arg9[%c0_30, %c0_31] : memref<16x64xf32, #tpu.memory_space<vmem>>, vector<16x64xf32>
      tpu.vector_store %arg9[%c0_30, %c0_31], %51 {strides = array<i32>} : memref<16x64xf32, #tpu.memory_space<vmem>>, vector<16x64xf32>,
    } else {
    }
    %c0 = arith.constant 0 : index
    %c0_1 = arith.constant 0 : index
    %3 = vector.load %arg8[%c0, %c0_1] : memref<16x64xbf16, #tpu.memory_space<vmem>>, vector<16x64xbf16>
    %c0_2 = arith.constant 0 : index
    %c0_3 = arith.constant 0 : index
    %4 = vector.load %arg5[%c0_2, %c0_3] : memref<64x256xbf16, #tpu.memory_space<vmem>>, vector<64x256xbf16>
    %cst = arith.constant dense<0.000000e+00> : vector<16x256xf32>
    %5 = tpu.matmul %3, %4, %cst {dimension_numbers = #tpu.dot_dimension_numbers<[1], [0], [0], [1], [0, 0, 1, 1], [], []>} : vector<16x64xbf16>, vector<64x256xbf16>, vector<16x256xf32> -> vector<16x256xf32>
    %cst_4 = arith.constant 5.000000e-01 : f32
    %6 = vector.broadcast %cst_4 : f32 to vector<16x256xf32>
    %7 = arith.mulf %6, %5 : vector<16x256xf32>
    %cst_5 = arith.constant 0.707106769 : f32
    %8 = vector.broadcast %cst_5 : f32 to vector<16x256xf32>
    %9 = arith.mulf %5, %8 : vector<16x256xf32>
    %10 = math.erf %9 : vector<16x256xf32>
    %cst_6 = arith.constant 1.000000e+00 : f32
    %11 = vector.broadcast %cst_6 : f32 to vector<16x256xf32>
    %12 = arith.addf %11, %10 : vector<16x256xf32>
    %13 = arith.mulf %7, %12 : vector<16x256xf32>
    %c0_7 = arith.constant 0 : index
    %c0_8 = arith.constant 0 : index
    %14 = vector.load %arg9[%c0_7, %c0_8] : memref<16x64xf32, #tpu.memory_space<vmem>>, vector<16x64xf32>
    %15 = arith.truncf %13 : vector<16x256xf32> to vector<16x256xbf16>
    %c0_9 = arith.constant 0 : index
    %c0_10 = arith.constant 0 : index
    %16 = vector.load %arg6[%c0_9, %c0_10] : memref<256x64xbf16, #tpu.memory_space<vmem>>, vector<256x64xbf16>
    %cst_11 = arith.constant dense<0.000000e+00> : vector<16x64xf32>
    %17 = tpu.matmul %15, %16, %cst_11 {dimension_numbers = #tpu.dot_dimension_numbers<[1], [0], [0], [1], [0, 0, 1, 1], [], []>} : vector<16x256xbf16>, vector<256x64xbf16>, vector<16x64xf32> -> vector<16x64xf32>
    %18 = arith.addf %14, %17 : vector<16x64xf32>
    %c0_12 = arith.constant 0 : index
    %c0_13 = arith.constant 0 : index
    %19 = vector.load %arg9[%c0_12, %c0_13] : memref<16x64xf32, #tpu.memory_space<vmem>>, vector<16x64xf32>
    tpu.vector_store %arg9[%c0_12, %c0_13], %18 {strides = array<i32>} : memref<16x64xf32, #tpu.memory_space<vmem>>, vector<16x64xf32>,
    %c0_i32_14 = arith.constant 0 : i32
    %20 = arith.cmpi eq, %arg1, %c0_i32_14 : i32
    %21 = arith.extui %20 : i1 to i32
    %c0_i32_15 = arith.constant 0 : i32
    %22 = arith.cmpi ne, %21, %c0_i32_15 : i32
    scf.if %22 {
      %c0_16 = arith.constant 0 : index
      %c0_17 = arith.constant 0 : index
      %23 = vector.load %arg9[%c0_16, %c0_17] : memref<16x64xf32, #tpu.memory_space<vmem>>, vector<16x64xf32>
      %c0_18 = arith.constant 0 : index
      %c0_19 = arith.constant 0 : index
      %24 = vector.load %arg7[%c0_18, %c0_19] : memref<16x64xf32, #tpu.memory_space<vmem>>, vector<16x64xf32>
      tpu.vector_store %arg7[%c0_18, %c0_19], %23 {strides = array<i32>} : memref<16x64xf32, #tpu.memory_space<vmem>>, vector<16x64xf32>,
    } else {
    }
    return
  }
  func.func @transform_0(%arg0: i32, %arg1: i32) -> (i32, i32) {
    %c0_i32 = arith.constant 0 : i32
    %c0_i32_0 = arith.constant 0 : i32
    return %arg0, %c0_i32 : i32, i32
  }
  func.func @transform_1(%arg0: i32, %arg1: i32) -> (i32, i32) {
    %c0_i32 = arith.constant 0 : i32
    %c0_i32_0 = arith.constant 0 : i32
    %c0_i32_1 = arith.constant 0 : i32
    return %c0_i32, %c0_i32_0 : i32, i32
  }
  func.func @transform_2(%arg0: i32, %arg1: i32) -> (i32, i32) {
    %c0_i32 = arith.constant 0 : i32
    %c0_i32_0 = arith.constant 0 : i32
    %c0_i32_1 = arith.constant 0 : i32
    return %c0_i32, %c0_i32_0 : i32, i32
  }
  func.func @transform_3(%arg0: i32, %arg1: i32) -> (i32, i32) {
    %c0_i32 = arith.constant 0 : i32
    %c0_i32_0 = arith.constant 0 : i32
    return %c0_i32, %arg1 : i32, i32
  }
  func.func @transform_4(%arg0: i32, %arg1: i32) -> (i32, i32) {
    %c0_i32 = arith.constant 0 : i32
    %c0_i32_0 = arith.constant 0 : i32
    return %arg1, %c0_i32 : i32, i32
  }
  func.func @transform_5(%arg0: i32, %arg1: i32) -> (i32, i32) {
    %c0_i32 = arith.constant 0 : i32
    %c0_i32_0 = arith.constant 0 : i32
    return %arg0, %c0_i32 : i32, i32
  }
}

</mosaic_0001>

<bundles_post_ra>
// kernel: tpu_custom_call.1
= control target key start
LH: loop header
LB: loop body
LE: loop exit
PB: predicated region body
PF: predicated region fallthrough
CT: control target
= control target key end

     0   :  { %vm30_vm0 = vcmask 523264   ;;  %s1018_s0 = inlined_call_operand.vmem [shape: bf16[16,64], index: 0, kind: input, shape index: {}]   ;;  %s1019_s1 = inlined_call_operand.vmem [shape: f32[1,64], index: 1, kind: input, shape index: {}]   ;;  %s1020_s2 = inlined_call_operand.vmem [shape: f32[1,64], index: 2, kind: input, shape index: {}]   ;;  %s1021_s3 = inlined_call_operand.vmem [shape: bf16[64,256], index: 3, kind: input, shape index: {}]   ;;  %s1022_s4 = inlined_call_operand.vmem [shape: bf16[256,64], index: 4, kind: input, shape index: {}]   ;;  %s1023_s5 = inlined_call_operand.hbm [shape: f32[16,64], index: 5, kind: output, shape index: {}]  }
   0x1   :  { %v685_v0 = vld [vmem:[%s1018_s0] sm:$0xff]  }
   0x2   :  { %v686_v1 = vunpack.c.l.bf16 %v685_v0 }
   0x3   :  { %10 = vsyncpa [#allocation5], 0  ;;  %v687_v3 = vunpack.c.h.bf16 %v685_v0  ;;  %v735_v5 = vmov 64.0   ;;  %v583_v22 = vld [vmem:[%s1021_s3 + $0x30] sm:$0xf]  ;;  %vm96_vm6 = vcmask 519168  }
   0x4   :  { %v31_v2 = vsel %vm30_vm0, %v686_v1, 0.0  ;;  %695 = vrcp.f32 %v735_v5  ;;  %v667_v23 = vld [vmem:[%s1021_s3 + $0x34] sm:$0xf0]  ;;  %v666_v24 = vld [vmem:[%s1021_s3 + $0x34] sm:$0xf]  ;;  %s541_s7 = sshll.u32 %s1023_s5, 4  ;;  %s542_s7 = int_to_ptr.hbm [resolvable:$true] %s541_s7 }
   0x5   :  { %32 = vadd.xlane.f32.xlu0 %v31_v2  ;;  %v34_v4 = vsel %vm30_vm0, %v687_v3, 0.0  ;;  %v584_v25 = vor.u32 %v667_v23, %v583_v22  ;;  %v585_v26 = vld [vmem:[%s1021_s3 + $0x38] sm:$0xf0]  ;;  %v575_v30 = vld [vmem:[%s1021_s3 + $0x20] sm:$0xf]  ;;  %s738_s8 = smov 128  }
   0x6   :  { %v588_v28 = vor.u32 %v666_v24, %v585_v26  ;;  %v665_v31 = vld [vmem:[%s1021_s3 + $0x24] sm:$0xf0]  ;;  %v664_v32 = vld [vmem:[%s1021_s3 + $0x24] sm:$0xf]  ;;  %v577_v35 = vld [vmem:[%s1021_s3 + $0x28] sm:$0xf0] }
   0x7   :  { %164 = vmatpush.bf16.msra.mxu0 %v584_v25  ;;  %v576_v34 = vor.u32 %v665_v31, %v575_v30  ;;  %v580_v36 = vor.u32 %v664_v32, %v577_v35  ;;  %v567_v37 = vld [vmem:[%s1021_s3 + $0x10] sm:$0xf]  ;;  %v663_v38 = vld [vmem:[%s1021_s3 + $0x14] sm:$0xf0]  ;;  %v662_v39 = vld [vmem:[%s1021_s3 + $0x14] sm:$0xf] }
   0x8   :  { %178 = vmatpush.bf16.msra.mxu1 %v588_v28  ;;  %v568_v40 = vor.u32 %v663_v38, %v567_v37  ;;  %v569_v41 = vld [vmem:[%s1021_s3 + $0x18] sm:$0xf0]  ;;  %v559_v42 = vld [vmem:[%s1021_s3] sm:$0xf]  ;;  %v661_v43 = vld [vmem:[%s1021_s3 + $0x4] sm:$0xf0] }
   0x9   :  { %v572_v45 = vor.u32 %v662_v39, %v569_v41  ;;  %v660_v46 = vld [vmem:[%s1021_s3 + $0x4] sm:$0xf]  ;;  %v561_v47 = vld [vmem:[%s1021_s3 + $0x8] sm:$0xf0]  ;;  %v560_v49 = vor.u32 %v661_v43, %v559_v42  ;;  %v693_v60 = vld [vmem:[%s1019_s1] ss:$0 sm:$0xff] }
   0xa   :  { %v696_v6 = vpop.eup %695  ;;  %v564_v50 = vor.u32 %v660_v46, %v561_v47  ;;  %v694_v63 = vld [vmem:[%s1020_s2] ss:$0 sm:$0xff]  ;;  %v675_v26 = vld [vmem:[%s1022_s4 + $0x38] sm:$0xff]  ;;  %v674_v37 = vld [vmem:[%s1022_s4 + $0x30] sm:$0xff]  ;;  %s739_s9 = smov 8  }
   0xb   :  { %v38_v7 = vmul.f32 64.0, %v696_v6  ;;  %vm42_vm1 = vweird.f32 %v696_v6  ;;  %165 = vmatpush.bf16.msra.mxu0 %v576_v34  ;;  %496 = vmatpush.bf16.msra.mxu2 %v675_v26  ;;  %v682_v38 = vld [vmem:[%s1022_s4 + $0x70] sm:$0xff] }
   0xc   :  { %179 = vmatpush.bf16.msra.mxu1 %v580_v36 }
   0xd   :  { %35 = vadd.xlane.f32.xlu0 %v34_v4  ;;  %v39_v8 = vsub.f32 1.0, %v38_v7 }
   0xf   :  { %v40_v9 = vmul.f32 %v696_v6, %v39_v8  ;;  %166 = vmatpush.bf16.msra.mxu0 %v568_v40  ;;  %497 = vmatpush.bf16.msra.mxu2 %v674_v37 }
  0x10   :  { %180 = vmatpush.bf16.msra.mxu1 %v572_v45 }
  0x11   :  { %v41_v10 = vadd.f32 %v696_v6, %v40_v9 }
  0x13   :  { %v43_v11 = vsel %vm42_vm1, %v696_v6, %v41_v10  ;;  %167 = vmatpush.bf16.msra.mxu0 %v560_v49 }
  0x14   :  { %181 = vmatpush.bf16.msra.mxu1 %v564_v50  ;;  %v673_v50 = vld [vmem:[%s1022_s4 + $0x28] sm:$0xff] }
  0x15   :  { %498 = vmatpush.bf16.msra.mxu2 %v673_v50 }
  0x78   :  { %v33_v12 = vpop.xlane.xlu0 %32 }
  0x79   :  { %v44_v13 = vmul.f32 %v43_v11, %v33_v12 }
  0x7b   :  { %v775_v14 = vsub.f32 %v686_v1, %v44_v13 }
  0x7d   :  { %v48_v15 = vmul.f32 %v775_v14, %v775_v14 }
  0x7f   :  { %v50_v16 = vsel %vm30_vm0, %v48_v15, 0.0 }
  0x80   :  { %51 = vadd.xlane.f32.xlu1 %v50_v16  ;;  %v36_v17 = vpop.xlane.xlu0 %35 }
  0x81   :  { %v45_v18 = vmul.f32 %v43_v11, %v36_v17 }
  0x83   :  { %v780_v19 = vsub.f32 %v687_v3, %v45_v18 }
  0x85   :  { %v49_v20 = vmul.f32 %v780_v19, %v780_v19 }
  0x87   :  { %v53_v21 = vsel %vm30_vm0, %v49_v20, 0.0 }
  0x88   :  { %54 = vadd.xlane.f32.xlu1 %v53_v21 }
  0xf3   :  { %v52_v27 = vpop.xlane.xlu1 %51 }
  0xf4   :  { %v56_v29 = vmul.f32 %v52_v27, %v43_v11  ;;  %v683_v27 = vld [vmem:[%s1022_s4 + $0x78] sm:$0xff] }
  0xf5   :  { %510 = vmatpush.bf16.msra.mxu3 %v683_v27 }
  0xf6   :  { %v58_v33 = vadd.f32 1e-05, %v56_v29 }
  0xf8   :  { %697 = vrsqrt.f32 %v58_v33  ;;  %vm66_vm3 = vweird.f32 %v58_v33 }
  0xf9   :  { %511 = vmatpush.bf16.msra.mxu3 %v682_v38 }
  0xfb   :  { %v55_v44 = vpop.xlane.xlu1 %54 }
  0xfc   :  { %v57_v48 = vmul.f32 %v55_v44, %v43_v11 }
  0xfe   :  { %v698_v51 = vpop.eup %697  ;;  %v59_v52 = vadd.f32 1e-05, %v57_v48 }
  0xff   :  { %v61_v53 = vmul.f32 %v698_v51, %v58_v33  ;;  %vm67_vm2 = vweird.f32 %v698_v51 }
 0x100   :  { %699 = vrsqrt.f32 %v59_v52  ;;  %vm68_vm4 = vmor %vm66_vm3, %vm67_vm2  ;;  %vm76_vm7 = vweird.f32 %v59_v52 }
 0x101   :  { %v62_v54 = vmul.f32 %v698_v51, %v61_v53 }
 0x103   :  { %v63_v55 = vmul.f32 0.5, %v62_v54 }
 0x105   :  { %v64_v56 = vsub.f32 1.5, %v63_v55 }
 0x106   :  { %v700_v57 = vpop.eup %699 }
 0x107   :  { %v65_v58 = vmul.f32 %v698_v51, %v64_v56  ;;  %v71_v59 = vmul.f32 %v700_v57, %v59_v52  ;;  %vm77_vm5 = vweird.f32 %v700_v57 }
 0x108   :  { %vm78_vm8 = vmor %vm76_vm7, %vm77_vm5 }
 0x109   :  { %v69_v61 = vsel %vm68_vm4, %v698_v51, %v65_v58  ;;  %v72_v62 = vmul.f32 %v700_v57, %v71_v59  ;;  %v681_v51 = vld [vmem:[%s1022_s4 + $0x68] sm:$0xff] }
 0x10a   :  { %v80_v0 = vmul.f32 %v69_v61, %v775_v14  ;;  %512 = vmatpush.bf16.msra.mxu3 %v681_v51 }
 0x10b   :  { %v73_v1 = vmul.f32 0.5, %v72_v62 }
 0x10c   :  { %v86_v2 = vmul.f32 %v693_v60, %v80_v0  ;;  %v672_v0 = vld [vmem:[%s1022_s4 + $0x20] sm:$0xff] }
 0x10d   :  { %v74_v3 = vsub.f32 1.5, %v73_v1  ;;  %v680_v1 = vld [vmem:[%s1022_s4 + $0x60] sm:$0xff]  ;;  %499 = vmatpush.bf16.msra.mxu2 %v672_v0 }
 0x10e   :  { %v92_v4 = vadd.f32 %v694_v63, %v86_v2  ;;  %513 = vmatpush.bf16.msra.mxu3 %v680_v1 }
 0x10f   :  { %v75_v5 = vmul.f32 %v700_v57, %v74_v3 }
 0x110   :  { %v94_v6 = vpack.c.bf16 %v92_v4, %v92_v4 }
 0x111   :  { %v79_v7 = vsel %vm78_vm8, %v700_v57, %v75_v5 }
 0x112   :  { %97 = vst.msk [vmem:[#allocation2] sm:$0xf] %vm96_vm6, %v94_v6  ;;  %v81_v8 = vmul.f32 %v79_v7, %v780_v19 }
 0x114   :  { %v87_v9 = vmul.f32 %v693_v60, %v81_v8 }
 0x116   :  { %v93_v10 = vadd.f32 %v694_v63, %v87_v9 }
 0x118   :  { %v95_v11 = vpack.c.bf16 %v93_v10, %v93_v10 }
 0x11a   :  { %98 = vst.msk [vmem:[#allocation2 + $0x4] sm:$0xf] %vm96_vm6, %v95_v11 }
 0x121   :  { %v659_v12 = vld [vmem:[#allocation2] sm:$0xff] }
 0x122   :  { %589 = vmatmul.msk.bf16.vlgmr.msra.gmra.mxu0 %vm30_vm0, %v659_v12  ;;  %590 = vmatmul.msk.bf16.vlgmr.msra.gmra.mxu1 %vm30_vm0, %v659_v12 }
 0x19f   :  { %v843_v13 = vpop.f32.mrf.mxu0  ;;  %v845_v14 = vpop.f32.mrf.mxu1 }
 0x1a0   :  { %v848_v15 = vmul.f32 0.70710677, %v843_v13  ;;  %v851_v16 = vmul.f32 0.70710677, %v845_v14 }
 0x1a2   :  { %v196_v17 = vmul.f32 %v848_v15, %v848_v15  ;;  %v236_v18 = vmul.f32 %v851_v16, %v851_v16 }
 0x1a4   :  { %v857_v19 = vmin.f32 %v196_v17, 16.0  ;;  %v859_v20 = vmin.f32 %v236_v18, 16.0  ;;  %v671_v17 = vld [vmem:[%s1022_s4 + $0x18] sm:$0xff] }
 0x1a5   :  { %v679_v18 = vld [vmem:[%s1022_s4 + $0x58] sm:$0xff]  ;;  %500 = vmatpush.bf16.msra.mxu2 %v671_v17 }
 0x1a6   :  { %v198_v21 = vmul.f32 2.1237322e-06, %v857_v19  ;;  %v209_v22 = vmul.f32 3.8918573e-05, %v857_v19  ;;  %v249_v23 = vmul.f32 3.8918573e-05, %v859_v20  ;;  %514 = vmatpush.bf16.msra.mxu3 %v679_v18 }
 0x1a7   :  { %v864_v24 = vpop.f32.mrf.mxu0  ;;  %v866_v25 = vpop.f32.mrf.mxu1  ;;  %v238_v33 = vmul.f32 2.1237322e-06, %v859_v20 }
 0x1a8   :  { %v199_v28 = vadd.f32 0.00028619796, %v198_v21  ;;  %v210_v29 = vadd.f32 0.001143296, %v209_v22  ;;  %v250_v30 = vadd.f32 0.001143296, %v249_v23 }
 0x1a9   :  { %v875_v31 = vmul.f32 0.70710677, %v864_v24  ;;  %v880_v34 = vmul.f32 0.70710677, %v866_v25  ;;  %v239_v45 = vadd.f32 0.00028619796, %v238_v33 }
 0x1aa   :  { %v211_v32 = vmul.f32 %v210_v29, %v857_v19  ;;  %v251_v35 = vmul.f32 %v250_v30, %v859_v20  ;;  %v200_v39 = vmul.f32 %v199_v28, %v857_v19  ;;  %v678_v33 = vld [vmem:[%s1022_s4 + $0x50] sm:$0xff] }
 0x1ab   :  { %v276_v36 = vmul.f32 %v875_v31, %v875_v31  ;;  %v316_v41 = vmul.f32 %v880_v34, %v880_v34  ;;  %v240_v58 = vmul.f32 %v239_v45, %v859_v20  ;;  %515 = vmatpush.bf16.msra.mxu3 %v678_v33  ;;  %v677_v45 = vld [vmem:[%s1022_s4 + $0x48] sm:$0xff] }
 0x1ac   :  { %v212_v40 = vadd.f32 0.014752088, %v211_v32  ;;  %v252_v42 = vadd.f32 0.014752088, %v251_v35  ;;  %v201_v52 = vadd.f32 0.0036580483, %v200_v39 }
 0x1ad   :  { %v894_v43 = vmin.f32 %v276_v36, 16.0  ;;  %v897_v46 = vmin.f32 %v316_v41, 16.0  ;;  %v241_v7 = vadd.f32 0.0036580483, %v240_v58  ;;  %v670_v32 = vld [vmem:[%s1022_s4 + $0x10] sm:$0xff] }
 0x1ae   :  { %v213_v44 = vmul.f32 %v212_v40, %v857_v19  ;;  %v253_v47 = vmul.f32 %v252_v42, %v859_v20  ;;  %v202_v2 = vmul.f32 %v201_v52, %v857_v19  ;;  %501 = vmatpush.bf16.msra.mxu2 %v670_v32 }
 0x1af   :  { %v278_v48 = vmul.f32 2.1237322e-06, %v894_v43  ;;  %v289_v49 = vmul.f32 3.8918573e-05, %v894_v43  ;;  %v318_v59 = vmul.f32 2.1237322e-06, %v897_v46  ;;  %v242_v28 = vmul.f32 %v241_v7, %v859_v20  ;;  %516 = vmatpush.bf16.msra.mxu3 %v677_v45 }
 0x1b0   :  { %v214_v53 = vadd.f32 0.112945676, %v213_v44  ;;  %v254_v54 = vadd.f32 0.112945676, %v253_v47  ;;  %v329_v63 = vmul.f32 3.8918573e-05, %v897_v46 }
 0x1b1   :  { %v279_v55 = vadd.f32 0.00028619796, %v278_v48  ;;  %v290_v56 = vadd.f32 0.001143296, %v289_v49  ;;  %v319_v11 = vadd.f32 0.00028619796, %v318_v59 }
 0x1b2   :  { %v215_v57 = vmul.f32 %v214_v53, %v857_v19  ;;  %v255_v60 = vmul.f32 %v254_v54, %v859_v20  ;;  %v330_v12 = vadd.f32 0.001143296, %v329_v63  ;;  %v203_v21 = vadd.f32 0.05243302, %v202_v2  ;;  %v669_v44 = vld [vmem:[%s1022_s4 + $0x8] sm:$0xff]  ;;  %v668_v59 = vld [vmem:[%s1022_s4] sm:$0xff] }
 0x1b3   :  { %v280_v61 = vmul.f32 %v279_v55, %v894_v43  ;;  %v291_v62 = vmul.f32 %v290_v56, %v894_v43  ;;  %v320_v30 = vmul.f32 %v319_v11, %v897_v46  ;;  %v243_v38 = vadd.f32 0.05243302, %v242_v28  ;;  %502 = vmatpush.bf16.msra.mxu2 %v669_v44 }
 0x1b4   :  { %v216_v3 = vadd.f32 0.4994258, %v215_v57  ;;  %v256_v4 = vadd.f32 0.4994258, %v255_v60  ;;  %v331_v27 = vmul.f32 %v330_v12, %v897_v46  ;;  %v204_v35 = vmul.f32 %v203_v21, %v857_v19  ;;  %v676_v60 = vld [vmem:[%s1022_s4 + $0x40] sm:$0xff]  ;;  %s737_s4 = smov [#allocation4]  }
 0x1b5   :  { %v292_v5 = vadd.f32 0.014752088, %v291_v62  ;;  %v281_v8 = vadd.f32 0.0036580483, %v280_v61  ;;  %v321_v41 = vadd.f32 0.0036580483, %v320_v30  ;;  %v244_v56 = vmul.f32 %v243_v38, %v859_v20  ;;  %517 = vmatpush.bf16.msra.mxu3 %v676_v60 }
 0x1b6   :  { %v217_v6 = vmul.f32 %v216_v3, %v857_v19  ;;  %v257_v9 = vmul.f32 %v256_v4, %v859_v20  ;;  %v332_v37 = vadd.f32 0.014752088, %v331_v27  ;;  %v205_v48 = vadd.f32 0.18741608, %v204_v35  ;;  %s539_s29 = sshll.u32 %s737_s4, 4  ;;  %s540_s29 = int_to_ptr.vmem [resolvable:$true] %s539_s29 }
 0x1b7   :  { %v293_v10 = vmul.f32 %v292_v5, %v894_v43  ;;  %v282_v29 = vmul.f32 %v281_v8, %v894_v43  ;;  %v322_v58 = vmul.f32 %v321_v41, %v897_v46  ;;  %503 = vmatpush.bf16.msra.mxu2 %v668_v59  ;;  %v245_v5 = vadd.f32 0.18741608, %v244_v56 }
 0x1b8   :  { %v931_v22 = vadd.f32 1.0, %v217_v6  ;;  %v933_v23 = vadd.f32 1.0, %v257_v9  ;;  %v333_v42 = vmul.f32 %v332_v37, %v897_v46  ;;  %v206_v61 = vmul.f32 %v205_v48, %v857_v19 }
 0x1b9   :  { %v294_v26 = vadd.f32 0.112945676, %v293_v10  ;;  %v283_v39 = vadd.f32 0.05243302, %v282_v29  ;;  %v323_v6 = vadd.f32 0.05243302, %v322_v58  ;;  %v246_v27 = vmul.f32 %v245_v5, %v859_v20 }
 0x1ba   :  { %701 = vrcp.f32 %v931_v22  ;;  %v334_v54 = vadd.f32 0.112945676, %v333_v42  ;;  %v230_v4 = vand.u32 2147483648, %v931_v22  ;;  %v207_v7 = vadd.f32 1.1283791, %v206_v61 }
 0x1bb   :  { %703 = vrcp.f32 %v933_v23  ;;  %v295_v36 = vmul.f32 %v294_v26, %v894_v43  ;;  %v284_v53 = vmul.f32 %v283_v39, %v894_v43  ;;  %vm224_vm10 = vweird.f32 %v931_v22 }
 0x1bc   :  { %v335_v62 = vmul.f32 %v334_v54, %v897_v46  ;;  %v228_v19 = vand.u32 2147483647, %v931_v22  ;;  %v231_v18 = vor.u32 1.1754944e-38, %v230_v4  ;;  %v324_v21 = vmul.f32 %v323_v6, %v897_v46 }
 0x1bd   :  { %v296_v40 = vadd.f32 0.4994258, %v295_v36  ;;  %v285_v1 = vadd.f32 0.18741608, %v284_v53  ;;  %v208_v26 = vmul.f32 %v207_v7, %v848_v15  ;;  %v270_v30 = vand.u32 2147483648, %v933_v23 }
 0x1be   :  { %v336_v2 = vadd.f32 0.4994258, %v335_v62  ;;  %vm229_vm12 = vcmp.eq.f32.partialorder %v228_v19, 8.507059e+37  ;;  %vm264_vm14 = vweird.f32 %v933_v23  ;;  %v325_v36 = vadd.f32 0.18741608, %v324_v21 }
 0x1bf   :  { %v297_v51 = vmul.f32 %v296_v40, %v894_v43  ;;  %v286_v11 = vmul.f32 %v285_v1, %v894_v43  ;;  %v268_v43 = vand.u32 2147483647, %v933_v23  ;;  %v247_v39 = vadd.f32 1.1283791, %v246_v27 }
 0x1c0   :  { %v702_v47 = vpop.eup %701  ;;  %v337_v8 = vmul.f32 %v336_v2, %v897_v46  ;;  %v271_v41 = vor.u32 1.1754944e-38, %v270_v30  ;;  %v188_v61 = vmul.f32 0.5, %v843_v13  ;;  %v190_v62 = vmul.f32 0.5, %v864_v24 }
 0x1c1   :  { %v956_v49 = vpop.eup %703  ;;  %v220_v50 = vmul.f32 %v702_v47, %v931_v22  ;;  %v298_v57 = vadd.f32 1.0, %v297_v51  ;;  %vm225_vm9 = vweird.f32 %v702_v47  ;;  %v287_v32 = vadd.f32 1.1283791, %v286_v11 }
 0x1c2   :  { %v260_v52 = vmul.f32 %v956_v49, %v933_v23  ;;  %vm226_vm11 = vmor %vm224_vm10, %vm225_vm9  ;;  %v979_v12 = vadd.f32 1.0, %v337_v8  ;;  %vm265_vm13 = vweird.f32 %v956_v49  ;;  %vm269_vm2 = vcmp.eq.f32.partialorder %v268_v43, 8.507059e+37 }
 0x1c3   :  { %v221_v55 = vsub.f32 1.0, %v220_v50  ;;  %705 = vrcp.f32 %v298_v57  ;;  %v308_v15 = vand.u32 2147483647, %v298_v57  ;;  %v310_v35 = vand.u32 2147483648, %v298_v57  ;;  %vm990_vm15 = vmor %vm264_vm14, %vm265_vm13 }
 0x1c4   :  { %v261_v0 = vsub.f32 1.0, %v260_v52  ;;  %707 = vrcp.f32 %v979_v12  ;;  %vm304_vm3 = vweird.f32 %v298_v57  ;;  %v288_v44 = vmul.f32 %v287_v32, %v875_v31 }
 0x1c5   :  { %v222_v63 = vmul.f32 %v702_v47, %v221_v55  ;;  %vm309_vm5 = vcmp.eq.f32.partialorder %v308_v15, 8.507059e+37  ;;  %v311_v45 = vor.u32 1.1754944e-38, %v310_v35  ;;  %v248_v53 = vmul.f32 %v247_v39, %v851_v16 }
 0x1c6   :  { %v262_v9 = vmul.f32 %v956_v49, %v261_v0  ;;  %v348_v58 = vand.u32 2147483647, %v979_v12  ;;  %v350_v31 = vand.u32 2147483648, %v979_v12  ;;  %vm344_vm7 = vweird.f32 %v979_v12 }
 0x1c7   :  { %v223_v3 = vadd.f32 %v702_v47, %v222_v63  ;;  %v189_v24 = vmul.f32 0.5, %v845_v14 }
 0x1c8   :  { %v263_v29 = vadd.f32 %v956_v49, %v262_v9  ;;  %v351_v1 = vor.u32 1.1754944e-38, %v350_v31  ;;  %vm349_vm9 = vcmp.eq.f32.partialorder %v348_v58, 8.507059e+37  ;;  %v191_v9 = vmul.f32 0.5, %v866_v25 }
 0x1c9   :  { %v227_v10 = vsel %vm226_vm11, %v702_v47, %v223_v3  ;;  %v706_v17 = vpop.eup %705  ;;  %v326_v47 = vmul.f32 %v325_v36, %v897_v46 }
 0x1ca   :  { %v300_v22 = vmul.f32 %v706_v17, %v298_v57  ;;  %v232_v28 = vsel %vm229_vm12, %v231_v18, %v227_v10  ;;  %vm305_vm1 = vweird.f32 %v706_v17  ;;  %v267_v40 = vsel %vm990_vm15, %v956_v49, %v263_v29  ;;  %v708_v23 = vpop.eup %707 }
 0x1cb   :  { %v233_v20 = vmul.f32 %v232_v28, %v208_v26  ;;  %vm306_vm4 = vmor %vm304_vm3, %vm305_vm1  ;;  %v272_v48 = vsel %vm269_vm2, %v271_v41, %v267_v40  ;;  %v340_v51 = vmul.f32 %v708_v23, %v979_v12  ;;  %v327_v57 = vadd.f32 1.1283791, %v326_v47 }
 0x1cc   :  { %v301_v33 = vsub.f32 1.0, %v300_v22  ;;  %v273_v56 = vmul.f32 %v272_v48, %v248_v53  ;;  %vm345_vm6 = vweird.f32 %v708_v23 }
 0x1cd   :  { %v591_v52 = vclamps-f32 %v233_v20, 1.0  ;;  %v341_v55 = vsub.f32 1.0, %v340_v51  ;;  %v328_v16 = vmul.f32 %v327_v57, %v880_v34  ;;  %vm346_vm8 = vmor %vm344_vm7, %vm345_vm6 }
 0x1ce   :  { %v302_v38 = vmul.f32 %v706_v17, %v301_v33  ;;  %v592_v2 = vclamps-f32 %v273_v56, 1.0 }
 0x1cf   :  { %v342_v60 = vmul.f32 %v708_v23, %v341_v55  ;;  %v356_v46 = vadd.f32 1.0, %v591_v52 }
 0x1d0   :  { %v303_v42 = vadd.f32 %v706_v17, %v302_v38  ;;  %v357_v13 = vadd.f32 1.0, %v592_v2 }
 0x1d1   :  { %v343_v0 = vadd.f32 %v708_v23, %v342_v60  ;;  %v360_v5 = vmul.f32 %v356_v46, %v188_v61 }
 0x1d2   :  { %v307_v50 = vsel %vm306_vm4, %v706_v17, %v303_v42  ;;  %v361_v34 = vmul.f32 %v357_v13, %v189_v24  ;;  %v736_v17 = vmov 0.0  }
 0x1d3   :  { %v312_v49 = vsel %vm309_vm5, %v311_v45, %v307_v50  ;;  %v347_v4 = vsel %vm346_vm8, %v708_v23, %v343_v0  ;;  %99 = vst.msk [vmem:[#allocation3] sm:$0xff] %vm30_vm0, %v736_v17 }
 0x1d4   :  { %v313_v54 = vmul.f32 %v312_v49, %v288_v44  ;;  %v352_v6 = vsel %vm349_vm9, %v351_v1, %v347_v4  ;;  %100 = vst.msk [vmem:[#allocation3 + $0x8] sm:$0xff] %vm30_vm0, %v736_v17 }
 0x1d5   :  { %v353_v7 = vmul.f32 %v352_v6, %v328_v16 }
 0x1d6   :  { %v593_v59 = vclamps-f32 %v313_v54, 1.0 }
 0x1d7   :  { %v594_v8 = vclamps-f32 %v353_v7, 1.0 }
 0x1d8   :  { %v358_v63 = vadd.f32 1.0, %v593_v59 }
 0x1d9   :  { %v359_v10 = vadd.f32 1.0, %v594_v8 }
 0x1da   :  { %v362_v3 = vmul.f32 %v358_v63, %v190_v62  ;;  %v364_v21 = vld [vmem:[#allocation3] sm:$0xff] }
 0x1db   :  { %v363_v11 = vmul.f32 %v359_v10, %v191_v9  ;;  %v365_v28 = vld [vmem:[#allocation3 + $0x8] sm:$0xff] }
 0x1dc   :  { %v366_v19 = vpack.c.bf16 %v362_v3, %v360_v5 }
 0x1dd   :  { %v367_v12 = vpack.c.bf16 %v363_v11, %v361_v34 }
 0x1de   :  { %504 = vmatmul.bf16.vlgmr.msra.gmra.mxu2 %v366_v19 }
 0x1df   :  { %518 = vmatmul.bf16.vlgmr.msra.gmra.mxu3 %v367_v12 }
 0x261   :  { %v505_v18 = vpop.f32.mrf.mxu2 }
 0x262   :  { %v519_v26 = vpop.f32.mrf.mxu3 }
 0x263   :  { %v520_v27 = vadd.f32 %v519_v26, %v505_v18 }
 0x265   :  { %v524_v22 = vadd.f32 %v520_v27, %v364_v21 }
 0x267   :  { %526 = vst.msk [vmem:[#allocation3] sm:$0xff] %vm30_vm0, %v524_v22 }
 0x269   :  { %v507_v14 = vpop.f32.mrf.mxu2 }
 0x26a   :  { %v521_v25 = vpop.f32.mrf.mxu3 }
 0x26b   :  { %v522_v29 = vadd.f32 %v521_v25, %v507_v14 }
 0x26d   :  { %v525_v43 = vadd.f32 %v522_v29, %v365_v28 }
 0x26e   :  { %v531_v30 = vld [vmem:[#allocation3] sm:$0xff] }
 0x26f   :  { %527 = vst.msk [vmem:[#allocation3 + $0x8] sm:$0xff] %vm30_vm0, %v525_v43 }
 0x270   :  { %533 = vst.msk [vmem:[#allocation4] sm:$0xff] %vm30_vm0, %v531_v30 }
 0x276   :  { %v532_v32 = vld [vmem:[#allocation3 + $0x8] sm:$0xff] }
 0x277   :  { %534 = vst.msk [vmem:[#allocation4 + $0x8] sm:$0xff] %vm30_vm0, %v532_v32 }
 0x278   :  { %547 = dma.vmem_to_hbm [thread:$0]  %s540_s29, 256, %s542_s7, [#allocation5], %s738_s8, %s738_s8, %s739_s9  }
 0x279   :  { %733 = dma.done.wait [#allocation5], 256  }
 0x27a   :  { %734 = vsyncadd [#allocation5], 4294967040 }
 0x27b   :  { %552 = vsyncpa [#allocation5], 1 }

</bundles_post_ra>
